<compile_context>
chip_gen: v7x
topology: tpu7x:2x2x1
jax: 0.10.0
libtpu: 0.0.40
codegen_flags: <defaults>
</compile_context>

<pallas_src>
import jax
import jax.numpy as jnp
from jax.experimental import pallas as pl
from jax.experimental.pallas import tpu as pltpu


def _st_gcn_kernel(x_ref, m_ref, b1_ref, e_ref, w2_ref, b2_ref, o_ref):
    # x_ref : (T, C_in*V)           one batch element, lane-dense
    # m_ref : (C_in*V, C_out*V)     fused gcn (+BN1 scale) operator
    # b1_ref: (1, C_out*V)          fused gcn bias + BN1 shift
    # e_ref : (Kt, T, T)            temporal shift matrices eye(T, k=dt-pad)
    # w2_ref: (Kt*C_out*V, C_out*V) fused temporal conv (+BN2 scale) operator
    # b2_ref: (1, C_out*V)          fused temporal bias + BN2 shift
    kt = e_ref.shape[0]
    x = x_ref[...]                                               # (T, C_in*V)

    # ---- gcn (1x1 conv + graph contraction) + BN1(eval), one MXU dot ----
    g = jnp.dot(x, m_ref[...], preferred_element_type=jnp.float32)
    g = g + b1_ref[...]
    z = jnp.maximum(g, 0.0)                                      # ReLU

    # ---- temporal conv (Kt,1) + BN2(eval): shift rows via tiny (T,T)
    # matrices, concat the Kt shifted views along lanes, one big dot ----
    zs = [jnp.dot(e_ref[dt], z, preferred_element_type=jnp.float32)
          for dt in range(kt)]                                   # Kt static
    zcat = jnp.concatenate(zs, axis=1)                           # (T, Kt*C_out*V)
    out = jnp.dot(zcat, w2_ref[...], preferred_element_type=jnp.float32)
    out = out + b2_ref[...]

    # ---- residual (identity: C_in==C_out, stride==1) + final ReLU;
    # dropout p=0 is identity ----
    o_ref[...] = jnp.maximum(out + x, 0.0)


def st_gcn_forward(x, A, params):
    """Pallas forward of the st_gcn block. Returns (out, A)."""
    N, C_in, T, V = x.shape
    Wg, bg, Wt, bt, s1, h1, s2, h2 = params
    C_out = Wg.shape[1]
    Kt = Wt.shape[0]
    pad = (Kt - 1) // 2
    assert C_in == C_out, "identity residual path requires in == out channels"

    f32 = jnp.float32
    cin_v = C_in * V
    cout_v = C_out * V
    # Lane-dense layout requirements for this fused-kernel formulation.
    assert cin_v % 128 == 0 and cout_v % 128 == 0, "C*V must be a multiple of 128"
    assert T % 8 == 0, "T must be a multiple of the 8-sublane tile"

    # ---- one-time, batch-independent parameter folding (wrapper side) ----
    # gcn + BN1:   M[(i,v),(c,w)] = s1[c] * sum_k Wg[k,c,i] * A[k,v,w]
    M = jnp.einsum('kci,kvw,c->ivcw', Wg, A, s1).reshape(cin_v, cout_v).astype(f32)
    # gcn bias through the A contraction, scaled/shifted by BN1.
    b1 = (jnp.einsum('kc,kvw,c->cw', bg, A, s1) + h1[:, None])
    b1 = b1.reshape(1, cout_v).astype(f32)
    # temporal conv + BN2:  W2[(dt,c',w'),(c,w)] = s2[c]*Wt[dt,c,c']*delta(w',w)
    W2 = jnp.einsum('dcb,c,uw->dbucw', Wt, s2, jnp.eye(V, dtype=f32))
    W2 = W2.reshape(Kt * cout_v, cout_v).astype(f32)
    b2 = jnp.broadcast_to((s2 * bt + h2).reshape(C_out, 1), (C_out, V))
    b2 = b2.reshape(1, cout_v).astype(f32)
    # 'same' temporal padding expressed as shift matrices along T.
    E = jnp.stack([jnp.eye(T, k=dt - pad, dtype=f32) for dt in range(Kt)])

    # ---- lane-dense input layout: (N*T, C_in*V) (layout plumbing only) ----
    x_r = x.transpose(0, 2, 1, 3).reshape(N * T, cin_v).astype(f32)

    flops = (2 * N * T * cin_v * cout_v              # fused gcn dot
             + 2 * N * Kt * T * T * cout_v           # shift-matrix dots
             + 2 * N * T * (Kt * cout_v) * cout_v)   # fused temporal dot
    bytes_accessed = 4 * (x_r.size + N * T * cout_v + M.size + W2.size
                          + b1.size + b2.size + E.size)

    out_flat = pl.pallas_call(
        _st_gcn_kernel,
        out_shape=jax.ShapeDtypeStruct((N * T, cout_v), f32),
        grid=(N,),
        in_specs=[
            pl.BlockSpec((T, cin_v), lambda n: (n, 0)),             # x, per batch elem
            pl.BlockSpec((cin_v, cout_v), lambda n: (0, 0)),        # fused gcn operator
            pl.BlockSpec((1, cout_v), lambda n: (0, 0)),            # fused gcn bias
            pl.BlockSpec((Kt, T, T), lambda n: (0, 0, 0)),          # shift matrices
            pl.BlockSpec((Kt * cout_v, cout_v), lambda n: (0, 0)),  # fused tcn operator
            pl.BlockSpec((1, cout_v), lambda n: (0, 0)),            # fused tcn bias
        ],
        out_specs=pl.BlockSpec((T, cout_v), lambda n: (n, 0)),
        compiler_params=pltpu.CompilerParams(
            dimension_semantics=("parallel",)),
        cost_estimate=pl.CostEstimate(
            flops=flops, transcendentals=0, bytes_accessed=bytes_accessed),
    )(x_r, M, b1, E, W2, b2)

    out = out_flat.reshape(N, T, C_out, V).transpose(0, 2, 1, 3)
    return out, A


def st_gcn_reference(x, A, params):
    """Pure-JAX reference mirroring the PyTorch forward (eval BN, p=0 dropout)."""
    Wg, bg, Wt, bt, s1, h1, s2, h2 = params
    N, C_in, T, V = x.shape
    Kt = Wt.shape[0]
    pad = (Kt - 1) // 2
    # gcn: 1x1 conv then einsum('nkctv,kvw->nctw')
    y = jnp.einsum('kci,nitv->nkctv', Wg, x) + bg[None, :, :, None, None]
    g = jnp.einsum('nkctv,kvw->nctw', y, A)
    # tcn: BN -> ReLU -> (Kt,1) conv -> BN
    z = jnp.maximum(g * s1[None, :, None, None] + h1[None, :, None, None], 0.0)
    zp = jnp.pad(z, ((0, 0), (0, 0), (pad, pad), (0, 0)))
    out = jnp.zeros_like(g) + bt[None, :, None, None]
    for dt in range(Kt):
        out = out + jnp.einsum('co,notv->nctv', Wt[dt], zp[:, :, dt:dt + T, :])
    out = out * s2[None, :, None, None] + h2[None, :, None, None]
    return jnp.maximum(out + x, 0.0), A


def make_params(key, C_in, C_out, K, Kt):
    ks = jax.random.split(key, 10)
    Wg = 0.1 * jax.random.normal(ks[0], (K, C_out, C_in), jnp.float32)
    bg = 0.1 * jax.random.normal(ks[1], (K, C_out), jnp.float32)
    Wt = 0.1 * jax.random.normal(ks[2], (Kt, C_out, C_out), jnp.float32)
    bt = 0.1 * jax.random.normal(ks[3], (C_out,), jnp.float32)
    eps = 1e-5
    # BN1 (before ReLU) and BN2 (after temporal conv), eval-mode folded params
    g1 = 1.0 + 0.1 * jax.random.normal(ks[4], (C_out,), jnp.float32)
    b1 = 0.1 * jax.random.normal(ks[5], (C_out,), jnp.float32)
    m1 = 0.1 * jax.random.normal(ks[6], (C_out,), jnp.float32)
    v1 = jnp.abs(0.1 * jax.random.normal(ks[7], (C_out,), jnp.float32)) + 1.0
    g2 = 1.0 + 0.1 * jax.random.normal(ks[8], (C_out,), jnp.float32)
    b2 = 0.1 * jax.random.normal(ks[9], (C_out,), jnp.float32)
    m2 = jnp.zeros((C_out,), jnp.float32)
    v2 = jnp.ones((C_out,), jnp.float32)
    s1 = g1 / jnp.sqrt(v1 + eps)
    h1 = b1 - m1 * s1
    s2 = g2 / jnp.sqrt(v2 + eps)
    h2 = b2 - m2 * s2
    return (Wg, bg, Wt, bt, s1, h1, s2, h2)


if __name__ == "__main__":
    # Small shapes consistent with the module: N, C, T, V; K spatial kernels,
    # Kt odd temporal kernel. T*V = 128 and C*V = 128 -> lane-dense layout.
    N, C, T, V = 2, 8, 8, 16
    K, Kt = 3, 3

    key = jax.random.PRNGKey(0)
    kx, ka, kp = jax.random.split(key, 3)
    x = jax.random.normal(kx, (N, C, T, V), jnp.float32)
    A = jax.random.uniform(ka, (K, V, V), jnp.float32)
    params = make_params(kp, C, C, K, Kt)

    out, A_out = jax.jit(st_gcn_forward)(x, A, params)
    out = jax.block_until_ready(out)

    ref, _ = st_gcn_reference(x, A, params)
    assert out.shape == (N, C, T, V)
    assert jnp.allclose(out, ref, rtol=1e-4, atol=1e-4), "mismatch vs reference"
    assert jnp.allclose(A_out, A)

    print("KERNEL_OK")
</pallas_src>

<mosaic_0001>
module attributes {stable_mosaic.version = 11 : i64} {
  func.func @_st_gcn_kernel(%arg0: i32, %arg1: memref<8x128xf32, #tpu.memory_space<vmem>>, %arg2: memref<128x128xf32, #tpu.memory_space<vmem>>, %arg3: memref<1x128xf32, #tpu.memory_space<vmem>>, %arg4: memref<3x8x8xf32, #tpu.memory_space<vmem>>, %arg5: memref<384x128xf32, #tpu.memory_space<vmem>>, %arg6: memref<1x128xf32, #tpu.memory_space<vmem>>, %arg7: memref<8x128xf32, #tpu.memory_space<vmem>>) attributes {dimension_semantics = [#tpu.dimension_semantics<parallel>], iteration_bounds = array<i64: 2>, scalar_prefetch = 0 : i64, scratch_operands = 0 : i64, tpu.core_type = #tpu.core_type<tc>, window_params = [{transform_indices = @transform_0, window_bounds = array<i64: 8, 128>}, {pipeline_mode = #tpu.pipeline_mode<synchronous>, transform_indices = @transform_1, window_bounds = array<i64: 128, 128>}, {pipeline_mode = #tpu.pipeline_mode<synchronous>, transform_indices = @transform_2, window_bounds = array<i64: 1, 128>}, {pipeline_mode = #tpu.pipeline_mode<synchronous>, transform_indices = @transform_3, window_bounds = array<i64: 3, 8, 8>}, {pipeline_mode = #tpu.pipeline_mode<synchronous>, transform_indices = @transform_4, window_bounds = array<i64: 384, 128>}, {pipeline_mode = #tpu.pipeline_mode<synchronous>, transform_indices = @transform_5, window_bounds = array<i64: 1, 128>}, {transform_indices = @transform_6, window_bounds = array<i64: 8, 128>}]} {
    %c0 = arith.constant 0 : index
    %c0_0 = arith.constant 0 : index
    %0 = vector.load %arg1[%c0, %c0_0] : memref<8x128xf32, #tpu.memory_space<vmem>>, vector<8x128xf32>
    %c0_1 = arith.constant 0 : index
    %c0_2 = arith.constant 0 : index
    %1 = vector.load %arg2[%c0_1, %c0_2] : memref<128x128xf32, #tpu.memory_space<vmem>>, vector<128x128xf32>
    %cst = arith.constant dense<0.000000e+00> : vector<8x128xf32>
    %2 = tpu.matmul %0, %1, %cst {dimension_numbers = #tpu.dot_dimension_numbers<[1], [0], [0], [1], [0, 0, 1, 1], [], []>} : vector<8x128xf32>, vector<128x128xf32>, vector<8x128xf32> -> vector<8x128xf32>
    %c0_3 = arith.constant 0 : index
    %c0_4 = arith.constant 0 : index
    %3 = vector.load %arg3[%c0_3, %c0_4] : memref<1x128xf32, #tpu.memory_space<vmem>>, vector<1x128xf32>
    %4 = vector.broadcast %3 : vector<1x128xf32> to vector<8x128xf32>
    %5 = arith.addf %2, %4 : vector<8x128xf32>
    %cst_5 = arith.constant 0.000000e+00 : f32
    %6 = vector.broadcast %cst_5 : f32 to vector<8x128xf32>
    %7 = arith.maximumf %5, %6 : vector<8x128xf32>
    %c0_6 = arith.constant 0 : index
    %c0_7 = arith.constant 0 : index
    %c0_8 = arith.constant 0 : index
    %8 = vector.load %arg4[%c0_6, %c0_7, %c0_8] : memref<3x8x8xf32, #tpu.memory_space<vmem>>, vector<1x8x8xf32>
    %9 = vector.shape_cast %8 : vector<1x8x8xf32> to vector<8x8xf32>
    %cst_9 = arith.constant dense<0.000000e+00> : vector<8x128xf32>
    %10 = tpu.matmul %9, %7, %cst_9 {dimension_numbers = #tpu.dot_dimension_numbers<[1], [0], [0], [1], [0, 0, 1, 1], [], []>} : vector<8x8xf32>, vector<8x128xf32>, vector<8x128xf32> -> vector<8x128xf32>
    %c1 = arith.constant 1 : index
    %c0_10 = arith.constant 0 : index
    %c0_11 = arith.constant 0 : index
    %11 = vector.load %arg4[%c1, %c0_10, %c0_11] : memref<3x8x8xf32, #tpu.memory_space<vmem>>, vector<1x8x8xf32>
    %12 = vector.shape_cast %11 : vector<1x8x8xf32> to vector<8x8xf32>
    %cst_12 = arith.constant dense<0.000000e+00> : vector<8x128xf32>
    %13 = tpu.matmul %12, %7, %cst_12 {dimension_numbers = #tpu.dot_dimension_numbers<[1], [0], [0], [1], [0, 0, 1, 1], [], []>} : vector<8x8xf32>, vector<8x128xf32>, vector<8x128xf32> -> vector<8x128xf32>
    %c2 = arith.constant 2 : index
    %c0_13 = arith.constant 0 : index
    %c0_14 = arith.constant 0 : index
    %14 = vector.load %arg4[%c2, %c0_13, %c0_14] : memref<3x8x8xf32, #tpu.memory_space<vmem>>, vector<1x8x8xf32>
    %15 = vector.shape_cast %14 : vector<1x8x8xf32> to vector<8x8xf32>
    %cst_15 = arith.constant dense<0.000000e+00> : vector<8x128xf32>
    %16 = tpu.matmul %15, %7, %cst_15 {dimension_numbers = #tpu.dot_dimension_numbers<[1], [0], [0], [1], [0, 0, 1, 1], [], []>} : vector<8x8xf32>, vector<8x128xf32>, vector<8x128xf32> -> vector<8x128xf32>
    %17 = tpu.concatenate %10, %13, %16 in 1 : vector<8x128xf32>, vector<8x128xf32>, vector<8x128xf32> -> vector<8x384xf32>
    %c0_16 = arith.constant 0 : index
    %c0_17 = arith.constant 0 : index
    %18 = vector.load %arg5[%c0_16, %c0_17] : memref<384x128xf32, #tpu.memory_space<vmem>>, vector<384x128xf32>
    %cst_18 = arith.constant dense<0.000000e+00> : vector<8x128xf32>
    %19 = tpu.matmul %17, %18, %cst_18 {dimension_numbers = #tpu.dot_dimension_numbers<[1], [0], [0], [1], [0, 0, 1, 1], [], []>} : vector<8x384xf32>, vector<384x128xf32>, vector<8x128xf32> -> vector<8x128xf32>
    %c0_19 = arith.constant 0 : index
    %c0_20 = arith.constant 0 : index
    %20 = vector.load %arg6[%c0_19, %c0_20] : memref<1x128xf32, #tpu.memory_space<vmem>>, vector<1x128xf32>
    %21 = vector.broadcast %20 : vector<1x128xf32> to vector<8x128xf32>
    %22 = arith.addf %19, %21 : vector<8x128xf32>
    %23 = arith.addf %22, %0 : vector<8x128xf32>
    %cst_21 = arith.constant 0.000000e+00 : f32
    %24 = vector.broadcast %cst_21 : f32 to vector<8x128xf32>
    %25 = arith.maximumf %23, %24 : vector<8x128xf32>
    %c0_22 = arith.constant 0 : index
    %c0_23 = arith.constant 0 : index
    %26 = vector.load %arg7[%c0_22, %c0_23] : memref<8x128xf32, #tpu.memory_space<vmem>>, vector<8x128xf32>
    tpu.vector_store %arg7[%c0_22, %c0_23], %25 {strides = array<i32>} : memref<8x128xf32, #tpu.memory_space<vmem>>, vector<8x128xf32>,
    return
  }
  func.func @transform_0(%arg0: i32) -> (i32, i32) {
    %c0_i32 = arith.constant 0 : i32
    %c0_i32_0 = arith.constant 0 : i32
    return %arg0, %c0_i32 : i32, i32
  }
  func.func @transform_1(%arg0: i32) -> (i32, i32) {
    %c0_i32 = arith.constant 0 : i32
    %c0_i32_0 = arith.constant 0 : i32
    %c0_i32_1 = arith.constant 0 : i32
    return %c0_i32, %c0_i32_0 : i32, i32
  }
  func.func @transform_2(%arg0: i32) -> (i32, i32) {
    %c0_i32 = arith.constant 0 : i32
    %c0_i32_0 = arith.constant 0 : i32
    %c0_i32_1 = arith.constant 0 : i32
    return %c0_i32, %c0_i32_0 : i32, i32
  }
  func.func @transform_3(%arg0: i32) -> (i32, i32, i32) {
    %c0_i32 = arith.constant 0 : i32
    %c0_i32_0 = arith.constant 0 : i32
    %c0_i32_1 = arith.constant 0 : i32
    %c0_i32_2 = arith.constant 0 : i32
    return %c0_i32, %c0_i32_0, %c0_i32_1 : i32, i32, i32
  }
  func.func @transform_4(%arg0: i32) -> (i32, i32) {
    %c0_i32 = arith.constant 0 : i32
    %c0_i32_0 = arith.constant 0 : i32
    %c0_i32_1 = arith.constant 0 : i32
    return %c0_i32, %c0_i32_0 : i32, i32
  }
  func.func @transform_5(%arg0: i32) -> (i32, i32) {
    %c0_i32 = arith.constant 0 : i32
    %c0_i32_0 = arith.constant 0 : i32
    %c0_i32_1 = arith.constant 0 : i32
    return %c0_i32, %c0_i32_0 : i32, i32
  }
  func.func @transform_6(%arg0: i32) -> (i32, i32) {
    %c0_i32 = arith.constant 0 : i32
    %c0_i32_0 = arith.constant 0 : i32
    return %arg0, %c0_i32 : i32, i32
  }
}

</mosaic_0001>

<bundles_post_ra>
// kernel: st_gcn_forward.1
= control target key start
LH: loop header
LB: loop body
LE: loop exit
PB: predicated region body
PF: predicated region fallthrough
CT: control target
= control target key end

     0   :  { %s1131_s21 = smov 0   ;;  %s1402_s0 = inlined_call_operand.vmem [shape: f32[16,128], index: 0, kind: input, shape index: {}]   ;;  %s1403_s1 = inlined_call_operand.vmem [shape: f32[128,128], index: 1, kind: input, shape index: {}]   ;;  %s1404_s2 = inlined_call_operand.vmem [shape: f32[1,128], index: 2, kind: input, shape index: {}]   ;;  %s1405_s3 = inlined_call_operand.vmem [shape: f32[3,8,8], index: 3, kind: input, shape index: {}]   ;;  %s1406_s4 = inlined_call_operand.vmem [shape: f32[384,128], index: 4, kind: input, shape index: {}]   ;;  %s1407_s5 = inlined_call_operand.vmem [shape: f32[1,128], index: 5, kind: input, shape index: {}]   ;;  %s1408_s6 = inlined_call_operand.vmem [shape: f32[16,128], index: 6, kind: output, shape index: {}]  }
   0x1 LB: > { %s818_s22 = sadd.s32 4294967295, %s1091_s21   ;;  %p822_p0 = scmp.ge.s32.totalorder %s1091_s21, 1  ;;  %s1091_s21 = sphi %s1131_s21, %s16_s21  }
   0x2   : > { %p211_p1 = scmp.lt.s32.totalorder %s1091_s21, 3 }
   0x4   : > { %p212_p2 = pnand %p822_p0, %p211_p1 }
   0x5   : > { %v248_v0 = vld [vmem:[%s1403_s1] sm:$0xff] (!%p212_p2)  ;;  %v249_v1 = vld [vmem:[%s1403_s1 + $0x8] sm:$0xff] (!%p212_p2)  ;;  %v250_v2 = vld [vmem:[%s1403_s1 + $0x10] sm:$0xff] (!%p212_p2)  ;;  %v1093_v3 = vmov (!%p212_p2), 0.0|0.0   ;;  %vm1094_vm0 = vmmov (!%p212_p2), 0   ;;  %v1095_v6 = vmov (!%p212_p2), 0.0  }
   0x6   : > { %215 = sbr.rel (%p212_p2) target bundleno = 697 (0x2b9), region = 44  ;;  %994 = vmatprep.subr.bf16.mxu0 (!%p212_p2), %v1093_v3  ;;  %v995_v4 = vpack.c.bf16 (!%p212_p2), %v249_v1, %v248_v0  ;;  %v251_v5 = vld [vmem:[%s1403_s1 + $0x18] sm:$0xff] (!%p212_p2)  ;;  %941 = vmatprep.mubr.msk.f32.mxu0 (!%p212_p2), %vm1094_vm0, %v1095_v6  ;;  %v252_v8 = vld [vmem:[%s1403_s1 + $0x20] sm:$0xff] (!%p212_p2)  ;;  %v253_v9 = vld [vmem:[%s1403_s1 + $0x28] sm:$0xff] (!%p212_p2)  ;;  %p239_p3 = scmp.lt.s32.totalorder (!%p212_p2), %s818_s22, 1  ;;  %vm343_vm1 = vcmask (!%p212_p2), 64512  }
   0x7   : > { %944 = vmatprep.subr.mxu1 (!%p212_p2), %v1095_v6  ;;  %946 = vmatprep.mubr.msk.f32.mxu1 (!%p212_p2), %vm1094_vm0, %v1095_v6  ;;  %v998_v7 = vpack.c.bf16 (!%p212_p2), %v251_v5, %v250_v2  ;;  %v1001_v10 = vpack.c.bf16 (!%p212_p2), %v253_v9, %v252_v8  ;;  %v254_v11 = vld [vmem:[%s1403_s1 + $0x30] sm:$0xff] (!%p212_p2)  ;;  %v255_v12 = vld [vmem:[%s1403_s1 + $0x38] sm:$0xff] (!%p212_p2)  ;;  %v256_v14 = vld [vmem:[%s1403_s1 + $0x40] sm:$0xff] (!%p212_p2) }
   0x8   : > { %996 = vmatpush3.bf16.msra.mxu0 (!%p212_p2), %v995_v4  ;;  %v1004_v13 = vpack.c.bf16 (!%p212_p2), %v255_v12, %v254_v11  ;;  %v257_v15 = vld [vmem:[%s1403_s1 + $0x48] sm:$0xff] (!%p212_p2)  ;;  %v258_v17 = vld [vmem:[%s1403_s1 + $0x50] sm:$0xff] (!%p212_p2)  ;;  %v259_v18 = vld [vmem:[%s1403_s1 + $0x58] sm:$0xff] (!%p212_p2) }
   0x9   : > { %997 = vmatprep.subr.bf16.mxu0 (!%p212_p2), %v1093_v3  ;;  %v1007_v16 = vpack.c.bf16 (!%p212_p2), %v257_v15, %v256_v14  ;;  %v1010_v19 = vpack.c.bf16 (!%p212_p2), %v259_v18, %v258_v17  ;;  %v260_v20 = vld [vmem:[%s1403_s1 + $0x60] sm:$0xff] (!%p212_p2)  ;;  %v261_v21 = vld [vmem:[%s1403_s1 + $0x68] sm:$0xff] (!%p212_p2)  ;;  %v262_v23 = vld [vmem:[%s1403_s1 + $0x70] sm:$0xff] (!%p212_p2) }
   0xa   : > { %v1013_v22 = vpack.c.bf16 (!%p212_p2), %v261_v21, %v260_v20  ;;  %v263_v24 = vld [vmem:[%s1403_s1 + $0x78] sm:$0xff] (!%p212_p2)  ;;  %v599_v27 = vld [vmem:[%s1406_s4 + $0x100] sm:$0xff] (!%p212_p2)  ;;  %v600_v28 = vld [vmem:[%s1406_s4 + $0x108] sm:$0xff] (!%p212_p2) }
   0xb   : > { %v1016_v25 = vpack.c.bf16 (!%p212_p2), %v263_v24, %v262_v23  ;;  %v1051_v29 = vpack.c.bf16 (!%p212_p2), %v600_v28, %v599_v27  ;;  %v601_v30 = vld [vmem:[%s1406_s4 + $0x110] sm:$0xff] (!%p212_p2)  ;;  %v602_v31 = vld [vmem:[%s1406_s4 + $0x118] sm:$0xff] (!%p212_p2)  ;;  %v603_v33 = vld [vmem:[%s1406_s4 + $0x120] sm:$0xff] (!%p212_p2) }
   0xc   : > { %999 = vmatpush3.bf16.msra.mxu0 (!%p212_p2), %v998_v7  ;;  %v1054_v32 = vpack.c.bf16 (!%p212_p2), %v602_v31, %v601_v30  ;;  %v604_v34 = vld [vmem:[%s1406_s4 + $0x128] sm:$0xff] (!%p212_p2)  ;;  %v605_v36 = vld [vmem:[%s1406_s4 + $0x130] sm:$0xff] (!%p212_p2)  ;;  %v606_v37 = vld [vmem:[%s1406_s4 + $0x138] sm:$0xff] (!%p212_p2) }
   0xd   : > { %1000 = vmatprep.subr.bf16.mxu0 %v1093_v3  ;;  %s1410_s22 = smov (!%p239_p3, %s818_s22), 1  ;;  %v1057_v35 = vpack.c.bf16 %v604_v34, %v603_v33  ;;  %v1060_v38 = vpack.c.bf16 %v606_v37, %v605_v36  ;;  %v607_v39 = vld [vmem:[%s1406_s4 + $0x140] sm:$0xff]  ;;  %v608_v40 = vld [vmem:[%s1406_s4 + $0x148] sm:$0xff]  ;;  %v585_v54 = vld [vmem:[%s1406_s4 + $0x90] sm:$0xff] }
   0xe   : > { %s823_s9 = sshll.u32 %s1410_s22, 3  ;;  %v1063_v41 = vpack.c.bf16 %v608_v40, %v607_v39  ;;  %v825_v42 = vld [vmem:[%s1404_s2] ss:$0 sm:$0xff]  ;;  %v584_v49 = vld [vmem:[%s1406_s4 + $0x88] sm:$0xff]  ;;  %v586_v55 = vld [vmem:[%s1406_s4 + $0x98] sm:$0xff] }
   0xf   : > { %s242_s12 = scalar_lea.vmem %s1402_s0, %s823_s9  ;;  %v342_v47 = vld [vmem:[%s1405_s3] sm:$0xff]  ;;  %v827_v50 = vld [vmem:[%s1405_s3 + $0x8] sm:$0xff]  ;;  %v829_v56 = vld [vmem:[%s1405_s3 + $0x10] sm:$0xff]  ;;  %v1022_v58 = vpack.c.bf16 %v586_v55, %v585_v54  ;;  %s246_s16 = scalar_lea.vmem %s1408_s6, %s823_s9 }
  0x10   : > { %1002 = vmatpush3.bf16.msra.mxu0 %v1001_v10  ;;  %v1212_v26 = vld [vmem:[%s242_s12] sm:$0xff]  ;;  %v568_v53 = vld [vmem:[%s1406_s4 + $0x8] sm:$0xff]  ;;  %v569_v59 = vld [vmem:[%s1406_s4 + $0x10] sm:$0xff] }
  0x11   : > { %1003 = vmatprep.subr.bf16.mxu0 %v1093_v3  ;;  %v583_v48 = vld [vmem:[%s1406_s4 + $0x80] sm:$0xff]  ;;  %v570_v60 = vld [vmem:[%s1406_s4 + $0x18] sm:$0xff]  ;;  %v588_v62 = vld [vmem:[%s1406_s4 + $0xa8] sm:$0xff] }
  0x12   : > { %v1018_v51 = vpack.c.bf16 %v584_v49, %v583_v48  ;;  %v567_v52 = vld [vmem:[%s1406_s4] sm:$0xff]  ;;  %v1024_v63 = vpack.c.bf16 %v570_v60, %v569_v59  ;;  %v572_v2 = vld [vmem:[%s1406_s4 + $0x28] sm:$0xff]  ;;  %v589_v4 = vld [vmem:[%s1406_s4 + $0xb0] sm:$0xff] }
  0x13   : > { %v1020_v57 = vpack.c.bf16 %v568_v53, %v567_v52  ;;  %v587_v61 = vld [vmem:[%s1406_s4 + $0xa0] sm:$0xff]  ;;  %v590_v5 = vld [vmem:[%s1406_s4 + $0xb8] sm:$0xff]  ;;  %v573_v8 = vld [vmem:[%s1406_s4 + $0x30] sm:$0xff] }
  0x14   : > { %1005 = vmatpush3.bf16.msra.mxu0 %v1004_v13  ;;  %v1026_v0 = vpack.c.bf16 %v588_v62, %v587_v61  ;;  %v571_v1 = vld [vmem:[%s1406_s4 + $0x20] sm:$0xff]  ;;  %v1030_v7 = vpack.c.bf16 %v590_v5, %v589_v4  ;;  %v574_v9 = vld [vmem:[%s1406_s4 + $0x38] sm:$0xff]  ;;  %v592_v11 = vld [vmem:[%s1406_s4 + $0xc8] sm:$0xff] }
  0x15   : > { %1006 = vmatprep.subr.bf16.mxu0 %v1093_v3  ;;  %v591_v10 = vld [vmem:[%s1406_s4 + $0xc0] sm:$0xff]  ;;  %v1032_v12 = vpack.c.bf16 %v574_v9, %v573_v8  ;;  %v576_v15 = vld [vmem:[%s1406_s4 + $0x48] sm:$0xff]  ;;  %v594_v17 = vld [vmem:[%s1406_s4 + $0xd8] sm:$0xff] }
  0x16   : > { %v1034_v13 = vpack.c.bf16 %v592_v11, %v591_v10  ;;  %v575_v14 = vld [vmem:[%s1406_s4 + $0x40] sm:$0xff]  ;;  %v577_v20 = vld [vmem:[%s1406_s4 + $0x50] sm:$0xff]  ;;  %v578_v21 = vld [vmem:[%s1406_s4 + $0x58] sm:$0xff] }
  0x17   : > { %v1036_v18 = vpack.c.bf16 %v576_v15, %v575_v14  ;;  %v596_v23 = vld [vmem:[%s1406_s4 + $0xe8] sm:$0xff]  ;;  %v1040_v24 = vpack.c.bf16 %v578_v21, %v577_v20  ;;  %v579_v27 = vld [vmem:[%s1406_s4 + $0x60] sm:$0xff]  ;;  %v609_v30 = vld [vmem:[%s1406_s4 + $0x150] sm:$0xff] }
  0x18   : > { %1008 = vmatpush3.bf16.msra.mxu0 %v1007_v16  ;;  %v593_v16 = vld [vmem:[%s1406_s4 + $0xd0] sm:$0xff]  ;;  %v580_v28 = vld [vmem:[%s1406_s4 + $0x68] sm:$0xff]  ;;  %v610_v31 = vld [vmem:[%s1406_s4 + $0x158] sm:$0xff] }
  0x19   : > { %1009 = vmatprep.subr.bf16.mxu0 %v1093_v3  ;;  %v597_v33 = vld [vmem:[%s1406_s4 + $0xf0] sm:$0xff]  ;;  %v598_v34 = vld [vmem:[%s1406_s4 + $0xf8] sm:$0xff]  ;;  %v612_v40 = vld [vmem:[%s1406_s4 + $0x168] sm:$0xff] }
  0x1a   : > { %v581_v36 = vld [vmem:[%s1406_s4 + $0x70] sm:$0xff]  ;;  %v582_v37 = vld [vmem:[%s1406_s4 + $0x78] sm:$0xff]  ;;  %v831_v53 = vld [vmem:[%s1407_s5] ss:$0 sm:$0xff] }
  0x1b   : > { %v1048_v39 = vpack.c.bf16 %v582_v37, %v581_v36 }
  0x1c   : > { %1011 = vmatpush3.bf16.msra.mxu0 %v1010_v19  ;;  %v1038_v19 = vpack.c.bf16 %v594_v17, %v593_v16 }
  0x1d   : > { %1012 = vmatprep.subr.bf16.mxu0 %v1093_v3 }
  0x20   : > { %1014 = vmatpush3.bf16.msra.mxu0 %v1013_v22  ;;  %v595_v22 = vld [vmem:[%s1406_s4 + $0xe0] sm:$0xff] }
  0x21   : > { %1015 = vmatprep.subr.bf16.mxu0 %v1093_v3 }
  0x24   : > { %1017 = vmatpush3.bf16.msra.mxu0 %v1016_v25  ;;  %v1042_v25 = vpack.c.bf16 %v596_v23, %v595_v22 }
  0x25   : > { %1050 = vmatprep.subr.bf16.mxu0 %v1093_v3 }
  0x27   : > { %942 = vmatmul.mubr.f32.vlgmr.msra.gmra.mrb[0].mxu0 %v1212_v26 }
  0x28   : > { %991 = vmatprep.mubr.msk.f32.mxu0 %vm1094_vm0, %v1095_v6  ;;  %1052 = vmatpush3.bf16.msra.mxu0 %v1051_v29  ;;  %v1044_v29 = vpack.c.bf16 %v580_v28, %v579_v27 }
  0x29   : > { %1053 = vmatprep.subr.bf16.mxu0 %v1093_v3 }
  0x2c   : > { %1055 = vmatpush3.bf16.msra.mxu0 %v1054_v32  ;;  %v1066_v32 = vpack.c.bf16 %v610_v31, %v609_v30 }
  0x2d   : > { %1056 = vmatprep.subr.bf16.mxu0 %v1093_v3 }
  0x30   : > { %1058 = vmatpush3.bf16.msra.mxu0 %v1057_v35  ;;  %v1046_v35 = vpack.c.bf16 %v598_v34, %v597_v33 }
  0x31   : > { %1059 = vmatprep.subr.bf16.mxu0 %v1093_v3 }
  0x34   : > { %1061 = vmatpush3.bf16.msra.mxu0 %v1060_v38  ;;  %v611_v38 = vld [vmem:[%s1406_s4 + $0x160] sm:$0xff] }
  0x35   : > { %1062 = vmatprep.subr.bf16.mxu0 %v1093_v3 }
  0x38   : > { %1064 = vmatpush3.bf16.msra.mxu0 %v1063_v41  ;;  %v1069_v41 = vpack.c.bf16 %v612_v40, %v611_v38 }
  0x39   : > { %1065 = vmatprep.subr.bf16.mxu0 %v1093_v3 }
  0x3c   : > { %1067 = vmatpush3.bf16.msra.mxu0 %v1066_v32 }
  0x3d   : > { %1068 = vmatprep.subr.bf16.mxu0 %v1093_v3 }
  0x40   : > { %1070 = vmatpush3.bf16.msra.mxu0 %v1069_v41 }
  0x41   : > { %1071 = vmatprep.subr.bf16.mxu0 %v1093_v3 }
  0xfa   : > { %v337_v43 = vpop.f32.mrb[0].mxu0 }
  0xfb   : > { %v338_v44 = vadd.f32 %v825_v42, %v337_v43  ;;  %v943_v45 = vpop.f32.mrb[1].mxu0  ;;  %v613_v42 = vld [vmem:[%s1406_s4 + $0x170] sm:$0xff]  ;;  %v614_v43 = vld [vmem:[%s1406_s4 + $0x178] sm:$0xff] }
  0xfd   : > { %v341_v46 = vmax.f32 %v338_v44, 0.0  ;;  %v1072_v44 = vpack.c.bf16 %v614_v43, %v613_v42 }
  0xff   : > { %945 = vmatpush3.msra.mxu1 %v341_v46  ;;  %1073 = vmatpush3.bf16.msra.mxu0 %v1072_v44 }
 0x100   : > { %947 = vmatmul.mubr.msk.f32.vlgmr.msra.gmra.mrb[0].mxu1 %vm343_vm1, %v342_v47  ;;  %949 = vmatprep.subr.mxu1 %v1095_v6 }
 0x101   : > { %950 = vmatpush3.msra.mxu1 %v341_v46  ;;  %951 = vmatprep.mubr.msk.f32.mxu1 %vm1094_vm0, %v1095_v6 }
 0x102   : > { %954 = vmatprep.subr.mxu1 %v1095_v6 }
 0x104   : > { %952 = vmatmul.mubr.msk.f32.vlgmr.msra.gmra.mrb[2].mxu1 %vm343_vm1, %v827_v50 }
 0x105   : > { %955 = vmatpush3.msra.mxu1 %v341_v46  ;;  %956 = vmatprep.mubr.msk.f32.mxu1 %vm1094_vm0, %v1095_v6  ;;  %v1028_v6 = vpack.c.bf16 %v572_v2, %v571_v1 }
 0x106   : > { %1019 = vmatprep.subr.bf16.mxu1 %v1018_v51 }
 0x108   : > { %957 = vmatmul.mubr.msk.f32.vlgmr.msra.gmra.mrb[4].mxu1 %vm343_vm1, %v829_v56 }
 0x109   : > { %1021 = vmatpush3.bf16.msra.mxu1 %v1020_v57 }
 0x10a   : > { %1023 = vmatprep.subr.bf16.mxu1 %v1022_v58 }
 0x10d   : > { %1025 = vmatpush3.bf16.msra.mxu1 %v1024_v63 }
 0x10e   : > { %1027 = vmatprep.subr.bf16.mxu1 %v1026_v0 }
 0x111   : > { %1029 = vmatpush3.bf16.msra.mxu1 %v1028_v6 }
 0x112   : > { %1031 = vmatprep.subr.bf16.mxu1 %v1030_v7 }
 0x115   : > { %1033 = vmatpush3.bf16.msra.mxu1 %v1032_v12 }
 0x116   : > { %1035 = vmatprep.subr.bf16.mxu1 %v1034_v13 }
 0x119   : > { %1037 = vmatpush3.bf16.msra.mxu1 %v1036_v18 }
 0x11a   : > { %1039 = vmatprep.subr.bf16.mxu1 %v1038_v19 }
 0x11d   : > { %1041 = vmatpush3.bf16.msra.mxu1 %v1040_v24 }
 0x11e   : > { %1043 = vmatprep.subr.bf16.mxu1 %v1042_v25 }
 0x121   : > { %1045 = vmatpush3.bf16.msra.mxu1 %v1044_v29 }
 0x122   : > { %1047 = vmatprep.subr.bf16.mxu1 %v1046_v35 }
 0x125   : > { %1049 = vmatpush3.bf16.msra.mxu1 %v1048_v39 }
 0x1d3   : > { %v413_v45 = vpop.f32.mrb[0].mxu1 }
 0x1d4   : > { %v948_v46 = vpop.f32.mrb[1].mxu1 }
 0x1d7   : > { %v488_v47 = vpop.f32.mrb[2].mxu1 }
 0x1d8   : > { %v953_v48 = vpop.f32.mrb[3].mxu1  ;;  %686 = vmatprep.mubr.f32.mxu1 %v488_v47 }
 0x1d9   : > { %687 = vmatmul.mubr.f32.vlgmr.msra.gmra.mrb[6].mxu1 %v413_v45 }
 0x1db   : > { %v563_v49 = vpop.f32.mrb[4].mxu1 }
 0x1dc   : > { %v958_v50 = vpop.f32.mrb[5].mxu1  ;;  %992 = vmatmul.mubr.f32.vlgmr.msra.gmra.mrb[2].mxu0 %v563_v49 }
 0x2ac   : > { %v889_v51 = vpop.f32.mrb[6].mxu1 }
 0x2ad   : > { %v890_v52 = vpop.f32.mrb[7].mxu1 }
 0x2ae   : > { %v891_v54 = vadd.f32 %v890_v52, %v889_v51 }
 0x2af   : > { %v758_v3 = vpop.f32.mrb[2].mxu0 }
 0x2b0   : > { %v689_v55 = vadd.f32 %v891_v54, %v831_v53  ;;  %v993_v56 = vpop.f32.mrb[3].mxu0 }
 0x2b2   : > { %v759_v57 = vadd.f32 %v758_v3, %v689_v55 }
 0x2b4   : > { %v762_v58 = vadd.f32 %v759_v57, %v1212_v26 }
 0x2b6   : > { %v763_v59 = vmax.f32 %v762_v58, 0.0 }
 0x2b8   : > { %764 = vst [vmem:[%s246_s16] sm:$0xff] %v763_v59 }
 0x2b9 PF: > { %s16_s21 = sadd.s32 1, %s1091_s21  }
 0x2ba   : > { %p13_p4 = scmp.ge.s32.totalorder %s16_s21, 4  }
 0x2bc   :  { %15 = sbr.rel (!%p13_p4) target bundleno = 1 (0x1), region = 76 }

</bundles_post_ra>
